<compile_context>
chip_gen: v5e
topology: v5e:2x2
jax: 0.10.0
libtpu: 0.0.40
codegen_flags: <defaults>
</compile_context>

<pallas_src>
from functools import partial

import jax
import jax.numpy as jnp
import numpy as np
from jax import lax
from jax.experimental import pallas as pl
from jax.experimental.pallas import tpu as pltpu


def _round_up(x, m):
    return -(-x // m) * m


def make_dsconv_kernel(Cin_p, kH, kW, dilation, Wp, out_lanes, prebuilt):
    """Fused (conv kxk + BN + ReLU + conv 1x1 + BN + ReLU) kernel body."""
    taps = [(ky, kx) for ky in range(kH) for kx in range(kW)]

    def gemm_epilogue(patches, w1_ref, b1_ref, w2_ref, b2_ref, o_ref):
        # patches: (kH*kW*Cin_p, out_lanes) bf16, lane-dense.
        h = jnp.dot(w1_ref[...], patches, preferred_element_type=jnp.float32)
        h = jnp.maximum(h + b1_ref[...], 0.0)            # fused BN+bias+ReLU (f32)
        y = jnp.dot(w2_ref[...], h.astype(jnp.bfloat16),
                    preferred_element_type=jnp.float32)
        y = jnp.maximum(y + b2_ref[...], 0.0)            # fused BN+bias+ReLU (f32)
        o_ref[...] = y.astype(o_ref.dtype)               # unmasked lane-dense store

    if prebuilt:
        # stride > 1: the wrapper already built the patch matrix in HBM.
        def kernel(p_ref, w1_ref, b1_ref, w2_ref, b2_ref, o_ref):
            gemm_epilogue(p_ref[...], w1_ref, b1_ref, w2_ref, b2_ref, o_ref)
    else:
        # stride == 1: every tap is a pure lane-offset slice of the flattened
        # (per-image-pitch) image; write each tap's 8 rows into a VMEM scratch.
        def kernel(x_ref, w1_ref, b1_ref, w2_ref, b2_ref, o_ref, patch_ref):
            xv = x_ref[...]                               # (Cin_p, in_lanes) bf16
            for t, (ky, kx) in enumerate(taps):
                off = (ky * Wp + kx) * dilation
                patch_ref[t * Cin_p:(t + 1) * Cin_p, :] = xv[:, off:off + out_lanes]
            gemm_epilogue(patch_ref[...], w1_ref, b1_ref, w2_ref, b2_ref, o_ref)

    return kernel


@partial(jax.jit, static_argnames=("kernel_size", "stride", "padding",
                                   "dilation", "eps", "batch_tile"))
def dsconv2d_pallas(x_nchw, raw_params, *, kernel_size, stride=1, padding=0,
                    dilation=1, eps=1e-5, batch_tile=None):
    (w1_oihw, bconv1, g1, be1, m1, v1,
     w2_oihw, bconv2, g2, be2, m2, v2) = raw_params

    N, Cin, H, W = x_nchw.shape
    kH = kW = kernel_size
    C_mid = w1_oihw.shape[0]          # first conv is dense Cin->Cin in DSConv2d
    Cout = w2_oihw.shape[0]
    H_out = (H + 2 * padding - dilation * (kH - 1) - 1) // stride + 1
    W_out = (W + 2 * padding - dilation * (kW - 1) - 1) // stride + 1
    Hp, Wp = H + 2 * padding, W + 2 * padding
    Cin_p = _round_up(Cin, 8)         # pad channels to sublane tile
    kKC = kH * kW * Cin_p

    # ---- Fold BN (eval) + conv biases into bf16 weights / f32 bias columns.
    scale1 = g1 / jnp.sqrt(v1 + eps)
    scale2 = g2 / jnp.sqrt(v2 + eps)
    w1_pad = jnp.pad(w1_oihw, ((0, 0), (0, Cin_p - Cin), (0, 0), (0, 0)))
    # (C_mid, kH*kW*Cin_p), columns tap-major / channel-minor (matches patches).
    w1m = (jnp.transpose(w1_pad, (0, 2, 3, 1)).reshape(C_mid, kKC)
           * scale1[:, None]).astype(jnp.bfloat16)
    b1 = (be1 + (bconv1 - m1) * scale1).reshape(C_mid, 1).astype(jnp.float32)
    w2m = (w2_oihw[:, :, 0, 0] * scale2[:, None]).astype(jnp.bfloat16)
    b2 = (be2 + (bconv2 - m2) * scale2).reshape(Cout, 1).astype(jnp.float32)

    # ---- Batch folding: B images per grid step, side-by-side on lanes.
    B = N if batch_tile is None else max(1, min(int(batch_tile), N))
    num_tiles = -(-N // B)
    N_pad = num_tiles * B

    # One fused pad/convert: bf16 cast + batch ghosts + channel pad + spatial pad.
    x_bf = x_nchw.astype(jnp.bfloat16)
    x_pad = jnp.pad(x_bf, ((0, N_pad - N), (0, Cin_p - Cin),
                           (padding, padding), (padding, padding)))

    prebuilt = stride != 1
    if not prebuilt:
        # Per-image lane pitch: large enough that every tap slice of an image
        # stays inside that image's block; rounded to 128 for lane density.
        max_off = ((kH - 1) * Wp + (kW - 1)) * dilation
        L_blk = _round_up(max(Hp * Wp, H_out * Wp + max_off), 128)
        extra = _round_up(max_off, 128)        # tail lanes for last image's taps
        L_out = H_out * Wp                     # valid lanes per image (Wp pitch)
        out_lanes = B * L_blk                  # multiple of 128
        in_lanes = out_lanes + extra           # multiple of 128

        xf = x_pad.reshape(N_pad, Cin_p, Hp * Wp)
        xf = jnp.pad(xf, ((0, 0), (0, 0), (0, L_blk - Hp * Wp)))
        xf = xf.reshape(num_tiles, B, Cin_p, L_blk).transpose(0, 2, 1, 3)
        xf = xf.reshape(num_tiles, Cin_p, B * L_blk)
        xf = jnp.pad(xf, ((0, 0), (0, 0), (0, extra)))
        x_kernel = xf.transpose(1, 0, 2).reshape(Cin_p, num_tiles * in_lanes)

        x_spec = pl.BlockSpec((Cin_p, in_lanes), lambda t: (0, t))
        scratch = [pltpu.VMEM((kKC, out_lanes), jnp.bfloat16)]
    else:
        # stride > 1: build the (tap-major, channel-minor) patch matrix with
        # XLA strided slices so the kernel never does strided lane gathers.
        L_out = H_out * W_out
        L_blk = _round_up(L_out, 128)
        out_lanes = B * L_blk
        cols = []
        for ky in range(kH):
            for kx in range(kW):
                h0, w0 = ky * dilation, kx * dilation
                xs = x_pad[:, :, h0:h0 + stride * (H_out - 1) + 1:stride,
                                 w0:w0 + stride * (W_out - 1) + 1:stride]
                cols.append(xs.reshape(N_pad, Cin_p, L_out))
        patches = jnp.concatenate(cols, axis=1)              # (N_pad, kKC, L_out)
        patches = jnp.pad(patches, ((0, 0), (0, 0), (0, L_blk - L_out)))
        patches = patches.reshape(num_tiles, B, kKC, L_blk).transpose(0, 2, 1, 3)
        patches = patches.reshape(num_tiles, kKC, B * L_blk).transpose(1, 0, 2)
        x_kernel = patches.reshape(kKC, num_tiles * out_lanes)

        x_spec = pl.BlockSpec((kKC, out_lanes), lambda t: (0, t))
        scratch = []

    kernel = make_dsconv_kernel(Cin_p, kH, kW, dilation, Wp, out_lanes, prebuilt)

    out = pl.pallas_call(
        kernel,
        out_shape=jax.ShapeDtypeStruct((Cout, num_tiles * out_lanes), x_nchw.dtype),
        grid_spec=pltpu.PrefetchScalarGridSpec(
            num_scalar_prefetch=0,
            grid=(num_tiles,),
            in_specs=[
                x_spec,
                pl.BlockSpec((C_mid, kKC), lambda t: (0, 0)),
                pl.BlockSpec((C_mid, 1), lambda t: (0, 0)),
                pl.BlockSpec((Cout, C_mid), lambda t: (0, 0)),
                pl.BlockSpec((Cout, 1), lambda t: (0, 0)),
            ],
            out_specs=pl.BlockSpec((Cout, out_lanes), lambda t: (0, t)),
            scratch_shapes=scratch,
        ),
        compiler_params=pltpu.CompilerParams(dimension_semantics=("parallel",)),
    )(x_kernel, w1m, b1, w2m, b2)

    # Un-fold the batch from the lane axis and trim pitch padding.
    out = out.reshape(Cout, num_tiles, B, L_blk).transpose(1, 2, 0, 3)
    out = out.reshape(N_pad, Cout, L_blk)[:N, :, :L_out]
    if not prebuilt:
        out = out.reshape(N, Cout, H_out, Wp)[:, :, :, :W_out]
    else:
        out = out.reshape(N, Cout, H_out, W_out)
    return out


def ref_forward(x_nchw, raw, *, kernel_size, stride, padding, dilation, eps=1e-5):
    """Pure-JAX f32 reference mirroring the PyTorch module (BN in eval mode)."""
    (w1_oihw, bconv1, g1, be1, m1, v1, w2_oihw, bconv2, g2, be2, m2, v2) = raw
    y = lax.conv_general_dilated(
        x_nchw, w1_oihw, window_strides=(stride, stride),
        padding=[(padding, padding), (padding, padding)],
        rhs_dilation=(dilation, dilation),
        dimension_numbers=("NCHW", "OIHW", "NCHW"))
    y = y + bconv1[None, :, None, None]
    y = (y - m1[None, :, None, None]) / jnp.sqrt(v1 + eps)[None, :, None, None]
    y = y * g1[None, :, None, None] + be1[None, :, None, None]
    y = jnp.maximum(y, 0.0)
    z = lax.conv_general_dilated(
        y, w2_oihw, window_strides=(1, 1), padding=[(0, 0), (0, 0)],
        dimension_numbers=("NCHW", "OIHW", "NCHW"))
    z = z + bconv2[None, :, None, None]
    z = (z - m2[None, :, None, None]) / jnp.sqrt(v2 + eps)[None, :, None, None]
    z = z * g2[None, :, None, None] + be2[None, :, None, None]
    z = jnp.maximum(z, 0.0)
    return z


if __name__ == "__main__":
    # DSConv2d(4, 8, kernel_size=3, stride=1, padding=1) on input [2, 4, 16, 16].
    N, Cin, H, W = 2, 4, 16, 16
    Cout, K, P, D = 8, 3, 1, 1
    eps = 1e-5

    key = jax.random.PRNGKey(0)
    ks = jax.random.split(key, 13)
    x = jax.random.normal(ks[0], (N, Cin, H, W), jnp.float32)

    # Deterministic synthetic parameters (PyTorch layout: OIHW conv weights).
    w1_oihw = 0.1 * jax.random.normal(ks[1], (Cin, Cin, K, K), jnp.float32)
    bconv1 = 0.1 * jax.random.normal(ks[2], (Cin,), jnp.float32)
    g1 = 1.0 + 0.1 * jax.random.normal(ks[3], (Cin,), jnp.float32)
    be1 = 0.1 * jax.random.normal(ks[4], (Cin,), jnp.float32)
    m1 = 0.1 * jax.random.normal(ks[5], (Cin,), jnp.float32)
    v1 = 0.5 + jnp.abs(jax.random.normal(ks[6], (Cin,), jnp.float32))

    w2_oihw = 0.1 * jax.random.normal(ks[7], (Cout, Cin, 1, 1), jnp.float32)
    bconv2 = 0.1 * jax.random.normal(ks[8], (Cout,), jnp.float32)
    g2 = 1.0 + 0.1 * jax.random.normal(ks[9], (Cout,), jnp.float32)
    be2 = 0.1 * jax.random.normal(ks[10], (Cout,), jnp.float32)
    m2 = 0.1 * jax.random.normal(ks[11], (Cout,), jnp.float32)
    v2 = 0.5 + jnp.abs(jax.random.normal(ks[12], (Cout,), jnp.float32))

    raw = (w1_oihw, bconv1, g1, be1, m1, v1,
           w2_oihw, bconv2, g2, be2, m2, v2)

    # stride == 1: fully fused in-kernel im2col path (whole batch in one step).
    out = dsconv2d_pallas(x, raw, kernel_size=K, stride=1, padding=P,
                          dilation=D, eps=eps)
    out = jax.block_until_ready(out)
    ref = ref_forward(x, raw, kernel_size=K, stride=1, padding=P, dilation=D,
                      eps=eps)
    ref = jax.block_until_ready(ref)
    assert out.shape == (N, Cout, H, W), out.shape
    # bf16 matmul operands (f32 accumulation) vs f32 reference -> loose tol.
    np.testing.assert_allclose(np.asarray(out), np.asarray(ref),
                               rtol=2e-2, atol=2e-2)

    # stride == 2: decimation done in the wrapper, same fused GEMM kernel.
    out2 = dsconv2d_pallas(x, raw, kernel_size=K, stride=2, padding=P,
                           dilation=D, eps=eps)
    out2 = jax.block_until_ready(out2)
    ref2 = ref_forward(x, raw, kernel_size=K, stride=2, padding=P, dilation=D,
                       eps=eps)
    ref2 = jax.block_until_ready(ref2)
    assert out2.shape == ref2.shape, (out2.shape, ref2.shape)
    np.testing.assert_allclose(np.asarray(out2), np.asarray(ref2),
                               rtol=2e-2, atol=2e-2)

    print("KERNEL_OK")
</pallas_src>

<mosaic_0001>
module attributes {stable_mosaic.version = 11 : i64} {
  func.func @kernel(%arg0: i32, %arg1: memref<8x896xbf16, #tpu.memory_space<vmem>>, %arg2: memref<4x72xbf16, #tpu.memory_space<vmem>>, %arg3: memref<4x1xf32, #tpu.memory_space<vmem>>, %arg4: memref<8x4xbf16, #tpu.memory_space<vmem>>, %arg5: memref<8x1xf32, #tpu.memory_space<vmem>>, %arg6: memref<8x768xf32, #tpu.memory_space<vmem>>, %arg7: memref<72x768xbf16, #tpu.memory_space<vmem>>) attributes {dimension_semantics = [#tpu.dimension_semantics<parallel>], iteration_bounds = array<i64: 1>, scalar_prefetch = 0 : i64, scratch_operands = 1 : i64, tpu.core_type = #tpu.core_type<tc>, window_params = [{transform_indices = @transform_0, window_bounds = array<i64: 8, 896>}, {pipeline_mode = #tpu.pipeline_mode<synchronous>, transform_indices = @transform_1, window_bounds = array<i64: 4, 72>}, {pipeline_mode = #tpu.pipeline_mode<synchronous>, transform_indices = @transform_2, window_bounds = array<i64: 4, 1>}, {pipeline_mode = #tpu.pipeline_mode<synchronous>, transform_indices = @transform_3, window_bounds = array<i64: 8, 4>}, {pipeline_mode = #tpu.pipeline_mode<synchronous>, transform_indices = @transform_4, window_bounds = array<i64: 8, 1>}, {transform_indices = @transform_5, window_bounds = array<i64: 8, 768>}]} {
    %c0 = arith.constant 0 : index
    %c0_0 = arith.constant 0 : index
    %0 = vector.load %arg1[%c0, %c0_0] : memref<8x896xbf16, #tpu.memory_space<vmem>>, vector<8x896xbf16>
    %1 = vector.extract_strided_slice %0 {offsets = [0, 0], sizes = [8, 768], strides = [1, 1]} : vector<8x896xbf16> to vector<8x768xbf16>
    %c0_1 = arith.constant 0 : index
    %c0_2 = arith.constant 0 : index
    %2 = vector.load %arg7[%c0_1, %c0_2] : memref<72x768xbf16, #tpu.memory_space<vmem>>, vector<8x768xbf16>
    tpu.vector_store %arg7[%c0_1, %c0_2], %1 {strides = array<i32>} : memref<72x768xbf16, #tpu.memory_space<vmem>>, vector<8x768xbf16>,
    %3 = vector.extract_strided_slice %0 {offsets = [0, 1], sizes = [8, 768], strides = [1, 1]} : vector<8x896xbf16> to vector<8x768xbf16>
    %c8 = arith.constant 8 : index
    %c0_3 = arith.constant 0 : index
    %4 = vector.load %arg7[%c8, %c0_3] : memref<72x768xbf16, #tpu.memory_space<vmem>>, vector<8x768xbf16>
    tpu.vector_store %arg7[%c8, %c0_3], %3 {strides = array<i32>} : memref<72x768xbf16, #tpu.memory_space<vmem>>, vector<8x768xbf16>,
    %5 = vector.extract_strided_slice %0 {offsets = [0, 2], sizes = [8, 768], strides = [1, 1]} : vector<8x896xbf16> to vector<8x768xbf16>
    %c16 = arith.constant 16 : index
    %c0_4 = arith.constant 0 : index
    %6 = vector.load %arg7[%c16, %c0_4] : memref<72x768xbf16, #tpu.memory_space<vmem>>, vector<8x768xbf16>
    tpu.vector_store %arg7[%c16, %c0_4], %5 {strides = array<i32>} : memref<72x768xbf16, #tpu.memory_space<vmem>>, vector<8x768xbf16>,
    %7 = vector.extract_strided_slice %0 {offsets = [0, 18], sizes = [8, 768], strides = [1, 1]} : vector<8x896xbf16> to vector<8x768xbf16>
    %c24 = arith.constant 24 : index
    %c0_5 = arith.constant 0 : index
    %8 = vector.load %arg7[%c24, %c0_5] : memref<72x768xbf16, #tpu.memory_space<vmem>>, vector<8x768xbf16>
    tpu.vector_store %arg7[%c24, %c0_5], %7 {strides = array<i32>} : memref<72x768xbf16, #tpu.memory_space<vmem>>, vector<8x768xbf16>,
    %9 = vector.extract_strided_slice %0 {offsets = [0, 19], sizes = [8, 768], strides = [1, 1]} : vector<8x896xbf16> to vector<8x768xbf16>
    %c32 = arith.constant 32 : index
    %c0_6 = arith.constant 0 : index
    %10 = vector.load %arg7[%c32, %c0_6] : memref<72x768xbf16, #tpu.memory_space<vmem>>, vector<8x768xbf16>
    tpu.vector_store %arg7[%c32, %c0_6], %9 {strides = array<i32>} : memref<72x768xbf16, #tpu.memory_space<vmem>>, vector<8x768xbf16>,
    %11 = vector.extract_strided_slice %0 {offsets = [0, 20], sizes = [8, 768], strides = [1, 1]} : vector<8x896xbf16> to vector<8x768xbf16>
    %c40 = arith.constant 40 : index
    %c0_7 = arith.constant 0 : index
    %12 = vector.load %arg7[%c40, %c0_7] : memref<72x768xbf16, #tpu.memory_space<vmem>>, vector<8x768xbf16>
    tpu.vector_store %arg7[%c40, %c0_7], %11 {strides = array<i32>} : memref<72x768xbf16, #tpu.memory_space<vmem>>, vector<8x768xbf16>,
    %13 = vector.extract_strided_slice %0 {offsets = [0, 36], sizes = [8, 768], strides = [1, 1]} : vector<8x896xbf16> to vector<8x768xbf16>
    %c48 = arith.constant 48 : index
    %c0_8 = arith.constant 0 : index
    %14 = vector.load %arg7[%c48, %c0_8] : memref<72x768xbf16, #tpu.memory_space<vmem>>, vector<8x768xbf16>
    tpu.vector_store %arg7[%c48, %c0_8], %13 {strides = array<i32>} : memref<72x768xbf16, #tpu.memory_space<vmem>>, vector<8x768xbf16>,
    %15 = vector.extract_strided_slice %0 {offsets = [0, 37], sizes = [8, 768], strides = [1, 1]} : vector<8x896xbf16> to vector<8x768xbf16>
    %c56 = arith.constant 56 : index
    %c0_9 = arith.constant 0 : index
    %16 = vector.load %arg7[%c56, %c0_9] : memref<72x768xbf16, #tpu.memory_space<vmem>>, vector<8x768xbf16>
    tpu.vector_store %arg7[%c56, %c0_9], %15 {strides = array<i32>} : memref<72x768xbf16, #tpu.memory_space<vmem>>, vector<8x768xbf16>,
    %17 = vector.extract_strided_slice %0 {offsets = [0, 38], sizes = [8, 768], strides = [1, 1]} : vector<8x896xbf16> to vector<8x768xbf16>
    %c64 = arith.constant 64 : index
    %c0_10 = arith.constant 0 : index
    %18 = vector.load %arg7[%c64, %c0_10] : memref<72x768xbf16, #tpu.memory_space<vmem>>, vector<8x768xbf16>
    tpu.vector_store %arg7[%c64, %c0_10], %17 {strides = array<i32>} : memref<72x768xbf16, #tpu.memory_space<vmem>>, vector<8x768xbf16>,
    %c0_11 = arith.constant 0 : index
    %c0_12 = arith.constant 0 : index
    %19 = vector.load %arg7[%c0_11, %c0_12] : memref<72x768xbf16, #tpu.memory_space<vmem>>, vector<72x768xbf16>
    %c0_13 = arith.constant 0 : index
    %c0_14 = arith.constant 0 : index
    %20 = vector.load %arg2[%c0_13, %c0_14] : memref<4x72xbf16, #tpu.memory_space<vmem>>, vector<4x72xbf16>
    %cst = arith.constant dense<0.000000e+00> : vector<4x768xf32>
    %21 = tpu.matmul %20, %19, %cst {dimension_numbers = #tpu.dot_dimension_numbers<[1], [0], [0], [1], [0, 0, 1, 1], [], []>} : vector<4x72xbf16>, vector<72x768xbf16>, vector<4x768xf32> -> vector<4x768xf32>
    %c0_15 = arith.constant 0 : index
    %c0_16 = arith.constant 0 : index
    %22 = vector.load %arg3[%c0_15, %c0_16] : memref<4x1xf32, #tpu.memory_space<vmem>>, vector<4x1xf32>
    %23 = vector.broadcast %22 : vector<4x1xf32> to vector<4x768xf32>
    %24 = arith.addf %21, %23 : vector<4x768xf32>
    %cst_17 = arith.constant 0.000000e+00 : f32
    %25 = vector.broadcast %cst_17 : f32 to vector<4x768xf32>
    %26 = arith.maximumf %24, %25 : vector<4x768xf32>
    %c0_18 = arith.constant 0 : index
    %c0_19 = arith.constant 0 : index
    %27 = vector.load %arg4[%c0_18, %c0_19] : memref<8x4xbf16, #tpu.memory_space<vmem>>, vector<8x4xbf16>
    %28 = arith.truncf %26 : vector<4x768xf32> to vector<4x768xbf16>
    %cst_20 = arith.constant dense<0.000000e+00> : vector<8x768xf32>
    %29 = tpu.matmul %27, %28, %cst_20 {dimension_numbers = #tpu.dot_dimension_numbers<[1], [0], [0], [1], [0, 0, 1, 1], [], []>} : vector<8x4xbf16>, vector<4x768xbf16>, vector<8x768xf32> -> vector<8x768xf32>
    %c0_21 = arith.constant 0 : index
    %c0_22 = arith.constant 0 : index
    %30 = vector.load %arg5[%c0_21, %c0_22] : memref<8x1xf32, #tpu.memory_space<vmem>>, vector<8x1xf32>
    %31 = vector.broadcast %30 : vector<8x1xf32> to vector<8x768xf32>
    %32 = arith.addf %29, %31 : vector<8x768xf32>
    %cst_23 = arith.constant 0.000000e+00 : f32
    %33 = vector.broadcast %cst_23 : f32 to vector<8x768xf32>
    %34 = arith.maximumf %32, %33 : vector<8x768xf32>
    %c0_24 = arith.constant 0 : index
    %c0_25 = arith.constant 0 : index
    %35 = vector.load %arg6[%c0_24, %c0_25] : memref<8x768xf32, #tpu.memory_space<vmem>>, vector<8x768xf32>
    tpu.vector_store %arg6[%c0_24, %c0_25], %34 {strides = array<i32>} : memref<8x768xf32, #tpu.memory_space<vmem>>, vector<8x768xf32>,
    return
  }
  func.func @transform_0(%arg0: i32) -> (i32, i32) {
    %c0_i32 = arith.constant 0 : i32
    %c0_i32_0 = arith.constant 0 : i32
    return %c0_i32, %arg0 : i32, i32
  }
  func.func @transform_1(%arg0: i32) -> (i32, i32) {
    %c0_i32 = arith.constant 0 : i32
    %c0_i32_0 = arith.constant 0 : i32
    %c0_i32_1 = arith.constant 0 : i32
    return %c0_i32, %c0_i32_0 : i32, i32
  }
  func.func @transform_2(%arg0: i32) -> (i32, i32) {
    %c0_i32 = arith.constant 0 : i32
    %c0_i32_0 = arith.constant 0 : i32
    %c0_i32_1 = arith.constant 0 : i32
    return %c0_i32, %c0_i32_0 : i32, i32
  }
  func.func @transform_3(%arg0: i32) -> (i32, i32) {
    %c0_i32 = arith.constant 0 : i32
    %c0_i32_0 = arith.constant 0 : i32
    %c0_i32_1 = arith.constant 0 : i32
    return %c0_i32, %c0_i32_0 : i32, i32
  }
  func.func @transform_4(%arg0: i32) -> (i32, i32) {
    %c0_i32 = arith.constant 0 : i32
    %c0_i32_0 = arith.constant 0 : i32
    %c0_i32_1 = arith.constant 0 : i32
    return %c0_i32, %c0_i32_0 : i32, i32
  }
  func.func @transform_5(%arg0: i32) -> (i32, i32) {
    %c0_i32 = arith.constant 0 : i32
    %c0_i32_0 = arith.constant 0 : i32
    return %c0_i32, %arg0 : i32, i32
  }
}

</mosaic_0001>

<bundles_post_ra>
// kernel: dsconv2d_pallas.1
= control target key start
LH: loop header
LB: loop body
LE: loop exit
PB: predicated region body
PF: predicated region fallthrough
CT: control target
= control target key end

     0   :  { %s782_s20 = smov 92   ;;  %s783_s21 = smov 90   ;;  %vm44_vm0 = vcmask 1043456   ;;  %vm196_vm1 = vcmask 744448   ;;  %vm171_vm2 = vcmask 752640   ;;  %vm221_vm3 = vcmask 736256   ;;  %s1047_s0 = inlined_call_operand.vmem [shape: bf16[8,896], index: 0, kind: input, shape index: {}]   ;;  %s1048_s1 = inlined_call_operand.vmem [shape: bf16[4,72], index: 1, kind: input, shape index: {}]   ;;  %s1049_s2 = inlined_call_operand.vmem [shape: f32[4,1], index: 2, kind: input, shape index: {}]   ;;  %s1050_s3 = inlined_call_operand.vmem [shape: bf16[8,4], index: 3, kind: input, shape index: {}]   ;;  %s1051_s4 = inlined_call_operand.vmem [shape: f32[8,1], index: 4, kind: input, shape index: {}]   ;;  %s1052_s5 = inlined_call_operand.vmem [shape: f32[8,768], index: 5, kind: output, shape index: {}]  }
   0x1   :  { %v21_v0 = vld [vmem:[%s1047_s0] sm:$0xff]  ;;  %v22_v1 = vld [vmem:[%s1047_s0 + $0x8] sm:$0xff]  ;;  %s784_s24 = smov 91   ;;  %v23_v2 = vld [vmem:[%s1047_s0 + $0x10] sm:$0xff]  ;;  %s785_s27 = smov 109   ;;  %vm121_vm4 = vcmask 891904  }
   0x2   :  { %158 = vrot.lane.b32.xlu1 %v21_v0, %s782_s20  ;;  %25 = vst [vmem:[#allocation2] sm:$0xff] %v21_v0  ;;  %208 = vrot.lane.b32.xlu0 %v21_v0, %s783_s21  ;;  %s786_s28 = smov 108   ;;  %s787_s29 = smov 126   ;;  %v24_v3 = vld [vmem:[%s1047_s0 + $0x18] sm:$0xf]  ;;  %vm146_vm5 = vcmask 883712  }
   0x3   :  { %183 = vrot.lane.b32.xlu2 %v21_v0, %s784_s24  ;;  %26 = vst [vmem:[#allocation2 + $0x8] sm:$0xff] %v22_v1  ;;  %s788_s30 = smov 110   ;;  %s789_s6 = smov 127   ;;  %vm96_vm6 = vcmask 900096   ;;  %vm71_vm7 = vcmask 1031168   ;;  %vm46_vm8 = vcmask 1039360  }
   0x4   :  { %27 = vst [vmem:[#allocation2 + $0x10] sm:$0xff] %v23_v2  ;;  %vm402_vm9 = vcmask 588800   ;;  %vm526_vm10 = vcmask 1041408   ;;  %vm522_vm11 = vcmask 31744  }
   0xa   :  { %160 = vrot.lane.b32.xlu1 %v22_v1, %s782_s20  ;;  %210 = vrot.lane.b32.xlu0 %v22_v1, %s783_s21 }
   0xb   :  { %185 = vrot.lane.b32.xlu2 %v22_v1, %s784_s24 }
  0x12   :  { %108 = vrot.lane.b32.xlu1 %v21_v0, %s785_s27  ;;  %212 = vrot.lane.b32.xlu0 %v23_v2, %s783_s21 }
  0x13   :  { %110 = vrot.lane.b32.xlu2 %v22_v1, %s785_s27 }
  0x1a   :  { %135 = vrot.lane.b32.xlu1 %v22_v1, %s786_s28  ;;  %133 = vrot.lane.b32.xlu0 %v21_v0, %s786_s28 }
  0x1b   :  { %58 = vrot.lane.b32.xlu2 %v21_v0, %s787_s29 }
  0x22   :  { %83 = vrot.lane.b32.xlu1 %v21_v0, %s788_s30  ;;  %60 = vrot.lane.b32.xlu0 %v22_v1, %s787_s29 }
  0x23   :  { %85 = vrot.lane.b32.xlu2 %v22_v1, %s788_s30 }
  0x2a   :  { %187 = vrot.lane.b32.xlu1 %v23_v2, %s784_s24  ;;  %162 = vrot.lane.b32.xlu0 %v23_v2, %s782_s20 }
  0x2b   :  { %32 = vrot.lane.b32.xlu2 %v21_v0, %s789_s6 }
  0x32   :  { %112 = vrot.lane.b32.xlu1 %v23_v2, %s785_s27  ;;  %34 = vrot.lane.b32.xlu0 %v22_v1, %s789_s6 }
  0x33   :  { %137 = vrot.lane.b32.xlu2 %v23_v2, %s786_s28 }
  0x3a   :  { %62 = vrot.lane.b32.xlu1 %v23_v2, %s787_s29  ;;  %214 = vrot.lane.b32.xlu0 %v24_v3, %s783_s21 }
  0x3b   :  { %87 = vrot.lane.b32.xlu2 %v23_v2, %s788_s30 }
  0x42   :  { %164 = vrot.lane.b32.xlu1 %v24_v3, %s782_s20  ;;  %36 = vrot.lane.b32.xlu0 %v23_v2, %s789_s6 }
  0x43   :  { %189 = vrot.lane.b32.xlu2 %v24_v3, %s784_s24 }
  0x4a   :  { %139 = vrot.lane.b32.xlu1 %v24_v3, %s786_s28  ;;  %114 = vrot.lane.b32.xlu0 %v24_v3, %s785_s27 }
  0x4b   :  { %64 = vrot.lane.b32.xlu2 %v24_v3, %s787_s29 }
  0x52   :  { %38 = vrot.lane.b32.xlu1 %v24_v3, %s789_s6  ;;  %89 = vrot.lane.b32.xlu0 %v24_v3, %s788_s30 }
  0x5d   :  { %v184_v4 = vpop.permute.xlu2 %183 }
  0x5e   :  { %v191_v5 = vrot.slane %v184_v4, 4 }
  0x65   :  { %v845_v6 = vpop.permute.xlu2 %185 }
  0x66   :  { %v192_v7 = vrot.slane %v845_v6, 4 }
  0x68   :  { %v195_v8 = vsel %vm44_vm0, %v191_v5, %v192_v7 }
  0x69   :  { %v197_v9 = vsel %vm196_vm1, %v184_v4, %v195_v8 }
  0x6a   :  { %205 = vst [vmem:[#allocation2 + $0xa8] sm:$0xff] %v197_v9 }
  0x6d   :  { %v852_v10 = vpop.permute.xlu2 %110 }
  0x6e   :  { %v117_v27 = vrot.slane %v852_v10, 4 }
  0x71   :  { %v768_v39 = vld [vmem:[#allocation2 + $0xa4] sm:$0xf0]  ;;  %v715_v44 = vld [vmem:[#allocation2 + $0xa8] sm:$0xf0] }
  0x74   :  { %v159_v11 = vpop.permute.xlu1 %158  ;;  %v209_v12 = vpop.permute.xlu0 %208 }
  0x75   :  { %v854_v13 = vpop.permute.xlu2 %58  ;;  %v166_v16 = vrot.slane %v159_v11, 4  ;;  %v216_v17 = vrot.slane %v209_v12, 4 }
  0x76   :  { %v66_v63 = vrot.slane %v854_v13, 4 }
  0x7c   :  { %v856_v14 = vpop.permute.xlu1 %160  ;;  %v211_v15 = vpop.permute.xlu0 %210 }
  0x7d   :  { %v167_v18 = vrot.slane %v856_v14, 4  ;;  %v217_v19 = vrot.slane %v211_v15, 4  ;;  %v859_v20 = vpop.permute.xlu2 %85 }
  0x7e   :  { %v92_v0 = vrot.slane %v859_v20, 4 }
  0x7f   :  { %v170_v21 = vsel %vm44_vm0, %v166_v16, %v167_v18  ;;  %v220_v22 = vsel %vm44_vm0, %v216_v17, %v217_v19 }
  0x80   :  { %v172_v23 = vsel %vm171_vm2, %v159_v11, %v170_v21  ;;  %v222_v24 = vsel %vm221_vm3, %v209_v12, %v220_v22 }
  0x81   :  { %180 = vst [vmem:[#allocation2 + $0x90] sm:$0xff] %v172_v23  ;;  %v342_v25 = vunpack.c.l.b16 %v222_v24  ;;  %v343_v26 = vunpack.c.h.b16 %v222_v24 }
  0x83   :  { %v372_v28 = vpack.c.b16 %v342_v25, %v342_v25  ;;  %v373_v29 = vpack.c.b16 %v343_v26, %v343_v26 }
  0x84   :  { %v109_v30 = vpop.permute.xlu1 %108  ;;  %v868_v31 = vpop.permute.xlu0 %212 }
  0x85   :  { %v116_v32 = vrot.slane %v109_v30, 4  ;;  %v218_v33 = vrot.slane %v868_v31, 4  ;;  %v871_v34 = vpop.permute.xlu2 %32  ;;  %v408_v35 = vsel %vm44_vm0, %v372_v28, 0  ;;  %v411_v36 = vsel %vm44_vm0, %v373_v29, 0 }
  0x86   :  { %428 = vmatpush.bf16.msra.mxu0 %v408_v35  ;;  %441 = vmatpush.bf16.msra.mxu1 %v411_v36 }
  0x87   :  { %v120_v37 = vsel %vm44_vm0, %v116_v32, %v117_v27  ;;  %v223_v38 = vsel %vm44_vm0, %v217_v19, %v218_v33 }
  0x88   :  { %v122_v40 = vsel %vm121_vm4, %v109_v30, %v120_v37  ;;  %v224_v41 = vsel %vm221_vm3, %v211_v15, %v223_v38  ;;  %v713_v42 = vld [vmem:[#allocation2 + $0x90] sm:$0xf]  ;;  %v765_v43 = vld [vmem:[#allocation2 + $0x94] sm:$0xf] }
  0x89   :  { %130 = vst [vmem:[#allocation2 + $0x60] sm:$0xff] %v122_v40  ;;  %v714_v45 = vor.u32 %v768_v39, %v713_v42  ;;  %v718_v46 = vor.u32 %v765_v43, %v715_v44  ;;  %v344_v47 = vunpack.c.l.b16 %v224_v41  ;;  %v345_v48 = vunpack.c.h.b16 %v224_v41 }
  0x8b   :  { %429 = vmatpush.bf16.msra.mxu0 %v714_v45  ;;  %442 = vmatpush.bf16.msra.mxu1 %v718_v46  ;;  %v374_v49 = vpack.c.b16 %v344_v47, %v344_v47  ;;  %v375_v50 = vpack.c.b16 %v345_v48, %v345_v48 }
  0x8c   :  { %v136_v51 = vpop.permute.xlu1 %135  ;;  %v134_v52 = vpop.permute.xlu0 %133 }
  0x8d   :  { %v142_v53 = vrot.slane %v136_v51, 4  ;;  %v141_v54 = vrot.slane %v134_v52, 4  ;;  %v883_v55 = vpop.permute.xlu2 %137  ;;  %v414_v56 = vsel %vm44_vm0, %v374_v49, 0  ;;  %v417_v57 = vsel %vm44_vm0, %v375_v50, 0 }
  0x8e   :  { %v143_v58 = vrot.slane %v883_v55, 4  ;;  %454 = vmatpush.bf16.msra.mxu2 %v414_v56  ;;  %467 = vmatpush.bf16.msra.mxu3 %v417_v57 }
  0x8f   :  { %v145_v59 = vsel %vm44_vm0, %v141_v54, %v142_v53 }
  0x90   :  { %v147_v60 = vsel %vm146_vm5, %v134_v52, %v145_v59  ;;  %v148_v61 = vsel %vm44_vm0, %v142_v53, %v143_v58  ;;  %v689_v12 = vld [vmem:[#allocation2 + $0x60] sm:$0xf]  ;;  %v759_v21 = vld [vmem:[#allocation2 + $0x64] sm:$0xf] }
  0x91   :  { %155 = vst [vmem:[#allocation2 + $0x78] sm:$0xff] %v147_v60  ;;  %v149_v62 = vsel %vm146_vm5, %v136_v51, %v148_v61 }
  0x92   :  { %156 = vst [vmem:[#allocation2 + $0x80] sm:$0xff] %v149_v62 }
  0x94   :  { %v84_v1 = vpop.permute.xlu1 %83  ;;  %v896_v2 = vpop.permute.xlu0 %60 }
  0x95   :  { %v91_v3 = vrot.slane %v84_v1, 4  ;;  %v67_v4 = vrot.slane %v896_v2, 4  ;;  %v899_v5 = vpop.permute.xlu2 %87 }
  0x96   :  { %v93_v8 = vrot.slane %v899_v5, 4 }
  0x97   :  { %v95_v9 = vsel %vm44_vm0, %v91_v3, %v92_v0  ;;  %v70_v11 = vsel %vm44_vm0, %v66_v63, %v67_v4  ;;  %v747_v3 = vld [vmem:[#allocation2 + $0x4] sm:$0xf] }
  0x98   :  { %v97_v15 = vsel %vm96_vm6, %v84_v1, %v95_v9  ;;  %v72_v16 = vsel %vm71_vm7, %v854_v13, %v70_v11  ;;  %v98_v17 = vsel %vm44_vm0, %v92_v0, %v93_v8  ;;  %v762_v19 = vld [vmem:[#allocation2 + $0x74] sm:$0xf0]  ;;  %v691_v22 = vld [vmem:[#allocation2 + $0x78] sm:$0xf0]  ;;  %v641_v1 = vld [vmem:[#allocation2] sm:$0xf] }
  0x99   :  { %105 = vst [vmem:[#allocation2 + $0x48] sm:$0xff] %v97_v15  ;;  %v99_v23 = vsel %vm96_vm6, %v859_v20, %v98_v17  ;;  %v690_v24 = vor.u32 %v762_v19, %v689_v12  ;;  %v694_v25 = vor.u32 %v759_v21, %v691_v22  ;;  %v763_v9 = vld [vmem:[#allocation2 + $0x7c] sm:$0xf0] }
  0x9a   :  { %80 = vst [vmem:[#allocation2 + $0x30] sm:$0xff] %v72_v16 }
  0x9b   :  { %106 = vst [vmem:[#allocation2 + $0x50] sm:$0xff] %v99_v23  ;;  %430 = vmatpush.bf16.msra.mxu0 %v690_v24  ;;  %443 = vmatpush.bf16.msra.mxu1 %v694_v25 }
  0x9c   :  { %v188_v26 = vpop.permute.xlu1 %187  ;;  %v914_v28 = vpop.permute.xlu0 %162 }
  0x9d   :  { %v193_v13 = vrot.slane %v188_v26, 4  ;;  %v168_v29 = vrot.slane %v914_v28, 4  ;;  %v190_v30 = vpop.permute.xlu2 %189 }
  0x9e   :  { %v194_v32 = vrot.slane %v190_v30, 4 }
  0x9f   :  { %v198_v35 = vsel %vm44_vm0, %v192_v7, %v193_v13  ;;  %v173_v20 = vsel %vm44_vm0, %v167_v18, %v168_v29  ;;  %v40_v18 = vrot.slane %v871_v34, 4 }
  0xa0   :  { %v199_v36 = vsel %vm196_vm1, %v845_v6, %v198_v35  ;;  %v174_v37 = vsel %vm171_vm2, %v856_v14, %v173_v20  ;;  %v200_v38 = vsel %vm44_vm0, %v193_v13, %v194_v32  ;;  %v756_v39 = vld [vmem:[#allocation2 + $0x44] sm:$0xf0]  ;;  %v667_v40 = vld [vmem:[#allocation2 + $0x48] sm:$0xf0]  ;;  %v965_v32 = vld [vmem:[%s1048_s1] sm:$0x3] }
  0xa1   :  { %206 = vst [vmem:[#allocation2 + $0xb0] sm:$0xff] %v199_v36  ;;  %v201_v41 = vsel %vm196_vm1, %v188_v26, %v200_v38  ;;  %v665_v7 = vld [vmem:[#allocation2 + $0x30] sm:$0xf]  ;;  %v753_v42 = vld [vmem:[#allocation2 + $0x34] sm:$0xf] }
  0xa2   :  { %181 = vst [vmem:[#allocation2 + $0x98] sm:$0xff] %v174_v37  ;;  %v666_v43 = vor.u32 %v756_v39, %v665_v7  ;;  %v670_v44 = vor.u32 %v753_v42, %v667_v40  ;;  %v757_v40 = vld [vmem:[#allocation2 + $0x4c] sm:$0xf0] }
  0xa3   :  { %207 = vst [vmem:[#allocation2 + $0xb8] sm:$0xff] %v201_v41 }
  0xa4   :  { %431 = vmatpush.bf16.msra.mxu0 %v666_v43  ;;  %444 = vmatpush.bf16.msra.mxu1 %v670_v44  ;;  %v932_v6 = vpop.permute.xlu1 %112  ;;  %v934_v14 = vpop.permute.xlu0 %34  ;;  %v675_v44 = vld [vmem:[#allocation2 + $0x50] sm:$0xf0] }
  0xa5   :  { %v118_v45 = vrot.slane %v932_v6, 4  ;;  %v41_v46 = vrot.slane %v934_v14, 4  ;;  %v65_v53 = vpop.permute.xlu2 %64 }
  0xa6   :  { %v69_v60 = vrot.slane %v65_v53, 4  ;;  %v748_v53 = vld [vmem:[#allocation2 + $0xc] sm:$0xf] }
  0xa7   :  { %v123_v47 = vsel %vm44_vm0, %v117_v27, %v118_v45  ;;  %v45_v48 = vsel %vm44_vm0, %v40_v18, %v41_v46 }
  0xa8   :  { %v124_v49 = vsel %vm121_vm4, %v852_v10, %v123_v47  ;;  %v47_v50 = vsel %vm46_vm8, %v871_v34, %v45_v48  ;;  %v769_v51 = vld [vmem:[#allocation2 + $0xac] sm:$0xf0]  ;;  %v723_v52 = vld [vmem:[#allocation2 + $0xb0] sm:$0xf0] }
  0xa9   :  { %131 = vst [vmem:[#allocation2 + $0x68] sm:$0xff] %v124_v49  ;;  %v721_v54 = vld [vmem:[#allocation2 + $0x98] sm:$0xf]  ;;  %v766_v56 = vld [vmem:[#allocation2 + $0x9c] sm:$0xf]  ;;  %v790_v49 = vmov 0  }
  0xaa   :  { %55 = vst [vmem:[#allocation2 + $0x18] sm:$0xff] %v47_v50  ;;  %v722_v57 = vor.u32 %v769_v51, %v721_v54  ;;  %v726_v59 = vor.u32 %v766_v56, %v723_v52  ;;  %780 = vset.pattern.permute.xlu2 %v790_v49  ;;  %781 = vset.pattern.permute.xlu0 %v790_v49  ;;  %v649_v52 = vld [vmem:[#allocation2 + $0x8] sm:$0xf]  ;;  %v770_v54 = vld [vmem:[#allocation2 + $0xb4] sm:$0xf0] }
  0xac   :  { %455 = vmatpush.bf16.msra.mxu2 %v722_v57  ;;  %468 = vmatpush.bf16.msra.mxu3 %v726_v59  ;;  %v63_v27 = vpop.permute.xlu1 %62  ;;  %v215_v61 = vpop.permute.xlu0 %214 }
  0xad   :  { %v68_v62 = vrot.slane %v63_v27, 4  ;;  %v219_v63 = vrot.slane %v215_v61, 4 }
  0xaf   :  { %v73_v10 = vsel %vm44_vm0, %v67_v4, %v68_v62  ;;  %v225_v34 = vsel %vm44_vm0, %v218_v33, %v219_v63  ;;  %v75_v0 = vsel %vm44_vm0, %v68_v62, %v69_v60  ;;  %v699_v4 = vld [vmem:[#allocation2 + $0x80] sm:$0xf0] }
  0xb0   :  { %v74_v11 = vsel %vm71_vm7, %v896_v2, %v73_v10  ;;  %v226_v12 = vsel %vm221_vm3, %v868_v31, %v225_v34  ;;  %v76_v15 = vsel %vm71_vm7, %v63_v27, %v75_v0  ;;  %v697_v16 = vld [vmem:[#allocation2 + $0x68] sm:$0xf]  ;;  %v760_v17 = vld [vmem:[#allocation2 + $0x6c] sm:$0xf]  ;;  %v731_v27 = vld [vmem:[#allocation2 + $0xb8] sm:$0xf0] }
  0xb1   :  { %81 = vst [vmem:[#allocation2 + $0x38] sm:$0xff] %v74_v11  ;;  %v750_v19 = vld [vmem:[#allocation2 + $0x14] sm:$0xf0]  ;;  %v643_v21 = vld [vmem:[#allocation2 + $0x18] sm:$0xf0]  ;;  %v698_v33 = vor.u32 %v763_v9, %v697_v16  ;;  %v702_v22 = vor.u32 %v760_v17, %v699_v4  ;;  %v346_v23 = vunpack.c.l.b16 %v226_v12  ;;  %v347_v24 = vunpack.c.h.b16 %v226_v12 }
  0xb2   :  { %v642_v25 = vor.u32 %v750_v19, %v641_v1  ;;  %v646_v26 = vor.u32 %v747_v3, %v643_v21  ;;  %82 = vst [vmem:[#allocation2 + $0x40] sm:$0xff] %v76_v15 }
  0xb3   :  { %456 = vmatpush.bf16.msra.mxu2 %v698_v33  ;;  %469 = vmatpush.bf16.msra.mxu3 %v702_v22  ;;  %v376_v2 = vpack.c.b16 %v346_v23, %v346_v23  ;;  %v377_v13 = vpack.c.b16 %v347_v24, %v347_v24 }
  0xb4   :  { %432 = vmatpush.bf16.msra.mxu0 %v642_v25  ;;  %445 = vmatpush.bf16.msra.mxu1 %v646_v26  ;;  %v165_v31 = vpop.permute.xlu1 %164  ;;  %v960_v30 = vpop.permute.xlu0 %36  ;;  %v657_v25 = vld [vmem:[#allocation2 + $0x10] sm:$0xf] }
  0xb5   :  { %v169_v35 = vrot.slane %v165_v31, 4  ;;  %v42_v20 = vrot.slane %v960_v30, 4  ;;  %v420_v36 = vsel %vm44_vm0, %v376_v2, 0  ;;  %v423_v37 = vsel %vm44_vm0, %v377_v13, 0  ;;  %v749_v2 = vld [vmem:[#allocation2 + $0x14] sm:$0xf] }
  0xb7   :  { %v175_v38 = vsel %vm44_vm0, %v168_v29, %v169_v35  ;;  %v48_v39 = vsel %vm44_vm0, %v41_v46, %v42_v20  ;;  %735 = vmatmul.msk.bf16.vlgmr.msra.gmra.mxu0 %vm402_vm9, %v965_v32  ;;  %736 = vmatmul.msk.bf16.vlgmr.msra.gmra.mxu1 %vm402_vm9, %v965_v32  ;;  %v261_v46 = vld [vmem:[%s1049_s2] sm:$0xf] }
  0xb8   :  { %480 = vmatpush.bf16.msrb.mxu0 %v420_v36  ;;  %493 = vmatpush.bf16.msrb.mxu1 %v423_v37  ;;  %v176_v41 = vsel %vm171_vm2, %v914_v28, %v175_v38  ;;  %v49_v7 = vsel %vm46_vm8, %v934_v14, %v48_v39  ;;  %v673_v42 = vld [vmem:[#allocation2 + $0x38] sm:$0xf]  ;;  %v754_v43 = vld [vmem:[#allocation2 + $0x3c] sm:$0xf] }
  0xb9   :  { %182 = vst [vmem:[#allocation2 + $0xa0] sm:$0xff] %v176_v41  ;;  %v674_v29 = vor.u32 %v757_v40, %v673_v42  ;;  %v678_v18 = vor.u32 %v754_v43, %v675_v44  ;;  %264 = vperm.xlu2 %780, %v261_v46   ;;  %v681_v19 = vld [vmem:[#allocation2 + $0x40] sm:$0xf]  ;;  %v755_v33 = vld [vmem:[#allocation2 + $0x44] sm:$0xf] }
  0xba   :  { %56 = vst [vmem:[#allocation2 + $0x20] sm:$0xff] %v49_v7 }
  0xbb   :  { %457 = vmatpush.bf16.msra.mxu2 %v674_v29  ;;  %470 = vmatpush.bf16.msra.mxu3 %v678_v18  ;;  %v516_v29 = vld [vmem:[%s1051_s4] sm:$0xff] }
  0xbc   :  { %v140_v47 = vpop.permute.xlu1 %139  ;;  %v115_v48 = vpop.permute.xlu0 %114  ;;  %519 = vperm.xlu0 %781, %v516_v29  }
  0xbd   :  { %v144_v28 = vrot.slane %v140_v47, 4  ;;  %v119_v14 = vrot.slane %v115_v48, 4 }
  0xbf   :  { %v150_v50 = vsel %vm44_vm0, %v143_v58, %v144_v28  ;;  %v125_v51 = vsel %vm44_vm0, %v118_v45, %v119_v14 }
  0xc0   :  { %v151_v56 = vsel %vm146_vm5, %v883_v55, %v150_v50  ;;  %v126_v57 = vsel %vm121_vm4, %v932_v6, %v125_v51  ;;  %v729_v59 = vld [vmem:[#allocation2 + $0xa0] sm:$0xf]  ;;  %v767_v60 = vld [vmem:[#allocation2 + $0xa4] sm:$0xf] }
  0xc1   :  { %157 = vst [vmem:[#allocation2 + $0x88] sm:$0xff] %v151_v56  ;;  %v751_v61 = vld [vmem:[#allocation2 + $0x1c] sm:$0xf0]  ;;  %v651_v62 = vld [vmem:[#allocation2 + $0x20] sm:$0xf0]  ;;  %v730_v58 = vor.u32 %v770_v54, %v729_v59  ;;  %v734_v63 = vor.u32 %v767_v60, %v731_v27 }
  0xc2   :  { %132 = vst [vmem:[#allocation2 + $0x70] sm:$0xff] %v126_v57  ;;  %v650_v10 = vor.u32 %v751_v61, %v649_v52  ;;  %v654_v45 = vor.u32 %v748_v53, %v651_v62 }
  0xc3   :  { %481 = vmatpush.bf16.msrb.mxu0 %v730_v58  ;;  %494 = vmatpush.bf16.msrb.mxu1 %v734_v63 }
  0xc4   :  { %458 = vmatpush.bf16.msra.mxu2 %v650_v10  ;;  %471 = vmatpush.bf16.msra.mxu3 %v654_v45  ;;  %v39_v34 = vpop.permute.xlu1 %38  ;;  %v90_v55 = vpop.permute.xlu0 %89 }
  0xc5   :  { %v43_v0 = vrot.slane %v39_v34, 4  ;;  %v94_v1 = vrot.slane %v90_v55, 4 }
  0xc7   :  { %v50_v6 = vsel %vm44_vm0, %v42_v20, %v43_v0  ;;  %v100_v3 = vsel %vm44_vm0, %v93_v8, %v94_v1  ;;  %737 = vmatmul.msk.bf16.vlgmr.msra.gmra.mxu2 %vm402_vm9, %v965_v32  ;;  %738 = vmatmul.msk.bf16.vlgmr.msra.gmra.mxu3 %vm402_vm9, %v965_v32 }
  0xc8   :  { %v51_v9 = vsel %vm46_vm8, %v960_v30, %v50_v6  ;;  %v101_v11 = vsel %vm96_vm6, %v899_v5, %v100_v3  ;;  %v764_v12 = vld [vmem:[#allocation2 + $0x84] sm:$0xf0]  ;;  %v707_v15 = vld [vmem:[#allocation2 + $0x88] sm:$0xf0] }
  0xc9   :  { %57 = vst [vmem:[#allocation2 + $0x28] sm:$0xff] %v51_v9  ;;  %v705_v16 = vld [vmem:[#allocation2 + $0x70] sm:$0xf]  ;;  %v761_v17 = vld [vmem:[#allocation2 + $0x74] sm:$0xf] }
  0xca   :  { %107 = vst [vmem:[#allocation2 + $0x58] sm:$0xff] %v101_v11  ;;  %v706_v4 = vor.u32 %v764_v12, %v705_v16  ;;  %v710_v8 = vor.u32 %v761_v17, %v707_v15 }
  0xcc   :  { %482 = vmatpush.bf16.msrb.mxu0 %v706_v4  ;;  %495 = vmatpush.bf16.msrb.mxu1 %v710_v8 }
  0xd0   :  { %v752_v26 = vld [vmem:[#allocation2 + $0x24] sm:$0xf0]  ;;  %v659_v5 = vld [vmem:[#allocation2 + $0x28] sm:$0xf0] }
  0xd1   :  { %v758_v21 = vld [vmem:[#allocation2 + $0x54] sm:$0xf0]  ;;  %v683_v22 = vld [vmem:[#allocation2 + $0x58] sm:$0xf0]  ;;  %v658_v13 = vor.u32 %v752_v26, %v657_v25  ;;  %v662_v31 = vor.u32 %v749_v2, %v659_v5 }
  0xd2   :  { %v682_v23 = vor.u32 %v758_v21, %v681_v19  ;;  %v686_v24 = vor.u32 %v755_v33, %v683_v22 }
  0xd4   :  { %483 = vmatpush.bf16.msrb.mxu0 %v682_v23  ;;  %496 = vmatpush.bf16.msrb.mxu1 %v686_v24 }
  0xd8   :  { %484 = vmatpush.bf16.msrb.mxu0 %v658_v13  ;;  %497 = vmatpush.bf16.msrb.mxu1 %v662_v31 }
  0xdb   :  { %739 = vmatmul.msk.bf16.vlgmr.msrb.gmra.mxu0 %vm402_vm9, %v965_v32  ;;  %740 = vmatmul.msk.bf16.vlgmr.msrb.gmra.mxu1 %vm402_vm9, %v965_v32  ;;  %v509_v32 = vld [vmem:[%s1050_s3] sm:$0xf] }
 0x113   :  { %v265_v30 = vpop.permute.xlu2 %264 }
 0x12e   :  { %v520_v55 = vpop.permute.xlu0 %519 }
 0x134   :  { %v434_v35 = vpop.f32.mrf.mxu0  ;;  %v447_v20 = vpop.f32.mrf.mxu1 }
 0x135   :  { %v435_v36 = vadd.f32 %v434_v35, %v265_v30  ;;  %v448_v37 = vadd.f32 %v447_v20, %v265_v30 }
 0x137   :  { %v503_v38 = vmax.f32 %v435_v36, 0.0  ;;  %v504_v39 = vmax.f32 %v448_v37, 0.0 }
 0x139   :  { %v510_v40 = vpack.c.bf16 %v503_v38, %v503_v38  ;;  %v511_v41 = vpack.c.bf16 %v504_v39, %v504_v39 }
 0x13b   :  { %v528_v7 = vsel %vm526_vm10, %v510_v40, 0  ;;  %v531_v42 = vsel %vm526_vm10, %v511_v41, 0 }
 0x13c   :  { %v436_v43 = vpop.f32.mrf.mxu0  ;;  %v449_v44 = vpop.f32.mrf.mxu1  ;;  %552 = vmatpush.bf16.msrb.mxu2 %v528_v7  ;;  %565 = vmatpush.bf16.msrb.mxu3 %v531_v42 }
 0x13f   :  { %741 = vmatmul.msk.bf16.vlgmr.msrb.gmra.mxu2 %vm522_vm11, %v509_v32  ;;  %742 = vmatmul.msk.bf16.vlgmr.msrb.gmra.mxu3 %vm522_vm11, %v509_v32 }
 0x14a   :  { %v460_v18 = vpop.f32.mrf.mxu2  ;;  %v473_v46 = vpop.f32.mrf.mxu3 }
 0x14b   :  { %v461_v47 = vadd.f32 %v460_v18, %v265_v30  ;;  %v474_v48 = vadd.f32 %v473_v46, %v265_v30 }
 0x14d   :  { %v505_v49 = vmax.f32 %v461_v47, 0.0  ;;  %v506_v28 = vmax.f32 %v474_v48, 0.0 }
 0x14f   :  { %v512_v14 = vpack.c.bf16 %v505_v49, %v505_v49  ;;  %v513_v50 = vpack.c.bf16 %v506_v28, %v506_v28 }
 0x151   :  { %v534_v51 = vsel %vm526_vm10, %v512_v14, 0  ;;  %v537_v52 = vsel %vm526_vm10, %v513_v50, 0 }
 0x152   :  { %v462_v53 = vpop.f32.mrf.mxu2  ;;  %v475_v54 = vpop.f32.mrf.mxu3  ;;  %578 = vmatpush.bf16.msra.mxu2 %v534_v51  ;;  %591 = vmatpush.bf16.msra.mxu3 %v537_v52 }
 0x155   :  { %743 = vmatmul.msk.bf16.vlgmr.msra.gmra.mxu2 %vm522_vm11, %v509_v32  ;;  %744 = vmatmul.msk.bf16.vlgmr.msra.gmra.mxu3 %vm522_vm11, %v509_v32 }
 0x158   :  { %v486_v56 = vpop.f32.mrf.mxu0  ;;  %v499_v57 = vpop.f32.mrf.mxu1 }
 0x159   :  { %v487_v59 = vadd.f32 %v486_v56, %v265_v30  ;;  %v500_v60 = vadd.f32 %v499_v57, %v265_v30 }
 0x15b   :  { %v507_v27 = vmax.f32 %v487_v59, 0.0  ;;  %v508_v61 = vmax.f32 %v500_v60, 0.0 }
 0x15d   :  { %v514_v62 = vpack.c.bf16 %v507_v27, %v507_v27  ;;  %v515_v58 = vpack.c.bf16 %v508_v61, %v508_v61 }
 0x15f   :  { %v540_v63 = vsel %vm526_vm10, %v514_v62, 0  ;;  %v543_v10 = vsel %vm526_vm10, %v515_v58, 0 }
 0x160   :  { %v488_v45 = vpop.f32.mrf.mxu0  ;;  %v501_v34 = vpop.f32.mrf.mxu1  ;;  %604 = vmatpush.bf16.msra.mxu0 %v540_v63  ;;  %617 = vmatpush.bf16.msra.mxu1 %v543_v10 }
 0x163   :  { %745 = vmatmul.msk.bf16.vlgmr.msra.gmra.mxu0 %vm522_vm11, %v509_v32  ;;  %746 = vmatmul.msk.bf16.vlgmr.msra.gmra.mxu1 %vm522_vm11, %v509_v32 }
 0x1c2   :  { %v554_v0 = vpop.f32.mrf.mxu2  ;;  %v567_v1 = vpop.f32.mrf.mxu3 }
 0x1c3   :  { %v555_v6 = vadd.f32 %v554_v0, %v520_v55  ;;  %v568_v3 = vadd.f32 %v567_v1, %v520_v55 }
 0x1c5   :  { %v623_v9 = vmax.f32 %v555_v6, 0.0  ;;  %v624_v11 = vmax.f32 %v568_v3, 0.0 }
 0x1c7   :  { %629 = vst [vmem:[%s1052_s5] sm:$0xff] %v623_v9 }
 0x1c8   :  { %630 = vst [vmem:[%s1052_s5 + $0x8] sm:$0xff] %v624_v11 }
 0x1ca   :  { %v556_v12 = vpop.f32.mrf.mxu2  ;;  %v569_v15 = vpop.f32.mrf.mxu3 }
 0x1d8   :  { %v580_v16 = vpop.f32.mrf.mxu2  ;;  %v593_v17 = vpop.f32.mrf.mxu3 }
 0x1d9   :  { %v581_v4 = vadd.f32 %v580_v16, %v520_v55  ;;  %v594_v8 = vadd.f32 %v593_v17, %v520_v55 }
 0x1db   :  { %v625_v19 = vmax.f32 %v581_v4, 0.0  ;;  %v626_v21 = vmax.f32 %v594_v8, 0.0 }
 0x1dd   :  { %631 = vst [vmem:[%s1052_s5 + $0x10] sm:$0xff] %v625_v19 }
 0x1de   :  { %632 = vst [vmem:[%s1052_s5 + $0x18] sm:$0xff] %v626_v21 }
 0x1e0   :  { %v606_v33 = vpop.f32.mrf.mxu0  ;;  %v619_v22 = vpop.f32.mrf.mxu1 }
 0x1e1   :  { %v607_v23 = vadd.f32 %v606_v33, %v520_v55  ;;  %v620_v24 = vadd.f32 %v619_v22, %v520_v55  ;;  %v582_v25 = vpop.f32.mrf.mxu2  ;;  %v595_v26 = vpop.f32.mrf.mxu3 }
 0x1e3   :  { %v627_v2 = vmax.f32 %v607_v23, 0.0  ;;  %v628_v5 = vmax.f32 %v620_v24, 0.0 }
 0x1e5   :  { %633 = vst [vmem:[%s1052_s5 + $0x20] sm:$0xff] %v627_v2 }
 0x1e6   :  { %634 = vst [vmem:[%s1052_s5 + $0x28] sm:$0xff] %v628_v5 }
 0x1e8   :  { %v608_v13 = vpop.f32.mrf.mxu0  ;;  %v621_v31 = vpop.f32.mrf.mxu1 }

</bundles_post_ra>
